<compile_context>
chip_gen: v7x
topology: tpu7x:2x2x1
jax: 0.10.0
libtpu: 0.0.40
codegen_flags: <defaults>
</compile_context>

<pallas_src>
import functools

import jax
import jax.numpy as jnp
from jax.experimental import pallas as pl
from jax.experimental.pallas import tpu as pltpu

_INV_SQRT2 = 0.7071067811865476


def _mlp_kernel(x_ref, w1_ref, b1_ref, w2_ref, b2_ref, o_ref):
    # x_ref: (tile_m, C_in) row tile; weights/biases are resident full blocks.
    x = x_ref[...]
    h = jnp.dot(x, w1_ref[...], preferred_element_type=jnp.float32) + b1_ref[...]
    # Exact erf GELU (matches torch.nn.GELU default).  A tanh-approx variant
    # would run on the EUP slot but changes numerics vs. the PyTorch module.
    h = 0.5 * h * (1.0 + jax.lax.erf(h * _INV_SQRT2))
    out = jnp.dot(h.astype(w2_ref.dtype), w2_ref[...],
                  preferred_element_type=jnp.float32) + b2_ref[...]
    o_ref[...] = out.astype(o_ref.dtype)


def _round_up(x, m):
    return ((x + m - 1) // m) * m


def _vmem_bytes_estimate(tile_m, c_in, hidden, c_out, itemsize):
    """Rough per-kernel VMEM footprint."""
    io = 2 * tile_m * (c_in + c_out) * itemsize                      # double-buffered x / out tiles
    weights = 2 * (c_in * hidden + hidden + hidden * c_out + c_out) * itemsize  # double-buffered params
    inter = 2 * tile_m * hidden * 4                                  # f32 hidden intermediate + temporaries
    return io + weights + inter


def _pick_tile_m(m, c_in, hidden, c_out, itemsize, vmem_budget=26 * 1024 * 1024):
    """Largest row tile (multiple of 8, <= 1024) that fits the VMEM budget and
    still gives >= 2 grid steps when M allows (v7x megacore)."""
    tile_m = min(1024, _round_up(max(8, (m + 1) // 2), 8))
    while tile_m > 8 and _vmem_bytes_estimate(tile_m, c_in, hidden, c_out, itemsize) > vmem_budget:
        tile_m = _round_up(tile_m // 2, 8)
    return tile_m


@functools.partial(jax.jit, static_argnames=("tile_m",))
def mlp_forward(x_nhwc, w1, b1, w2, b2, tile_m=None):
    """x_nhwc: (N, H, W, C_in). Weights stored transposed wrt nn.Linear:
    w1 (C_in, hidden), b1 (1, hidden), w2 (hidden, C_out), b2 (1, C_out).
    Returns (N, H, W, C_out)."""
    N, H, W, C_in = x_nhwc.shape
    hidden = w1.shape[1]
    C_out = w2.shape[1]
    M = N * H * W
    itemsize = jnp.dtype(x_nhwc.dtype).itemsize

    if tile_m is None:
        tile_m = _pick_tile_m(M, C_in, hidden, C_out, itemsize)

    x2d = x_nhwc.reshape(M, C_in)            # free view, no padding copy
    grid = ((M + tile_m - 1) // tile_m,)     # ragged last block: OOB rows masked by Pallas

    flops = 2 * M * (C_in * hidden + hidden * C_out)
    bytes_accessed = (M * C_in + M * C_out
                      + C_in * hidden + hidden + hidden * C_out + C_out) * itemsize
    cost = pl.CostEstimate(flops=flops, transcendentals=M * hidden,
                           bytes_accessed=bytes_accessed)

    vmem_limit = int(min(60 * 1024 * 1024,
                         max(24 * 1024 * 1024,
                             2 * _vmem_bytes_estimate(tile_m, C_in, hidden, C_out, itemsize))))

    out2d = pl.pallas_call(
        _mlp_kernel,
        out_shape=jax.ShapeDtypeStruct((M, C_out), x_nhwc.dtype),
        grid_spec=pltpu.PrefetchScalarGridSpec(
            num_scalar_prefetch=0,
            grid=grid,
            in_specs=[
                pl.BlockSpec((tile_m, C_in), lambda i: (i, 0)),   # x row tile
                pl.BlockSpec((C_in, hidden), lambda i: (0, 0)),   # w1 (resident)
                pl.BlockSpec((1, hidden), lambda i: (0, 0)),      # b1
                pl.BlockSpec((hidden, C_out), lambda i: (0, 0)),  # w2 (resident)
                pl.BlockSpec((1, C_out), lambda i: (0, 0)),       # b2
            ],
            out_specs=pl.BlockSpec((tile_m, C_out), lambda i: (i, 0)),
        ),
        compiler_params=pltpu.CompilerParams(
            dimension_semantics=("parallel",),
            vmem_limit_bytes=vmem_limit),
        cost_estimate=cost,
    )(x2d, w1, b1, w2, b2)

    return out2d.reshape(N, H, W, C_out)


def init_mlp_params(key, in_features, hidden_features=None, out_features=None,
                    dtype=jnp.float32):
    """Deterministic synthetic params matching nn.Linear shapes (stored transposed)."""
    hidden_features = hidden_features or in_features
    out_features = out_features or in_features
    k1, k2, k3, k4 = jax.random.split(key, 4)
    s1 = 1.0 / jnp.sqrt(in_features)
    s2 = 1.0 / jnp.sqrt(hidden_features)
    w1 = jax.random.uniform(k1, (in_features, hidden_features), dtype, -s1, s1)
    b1 = jax.random.uniform(k2, (1, hidden_features), dtype, -s1, s1)
    w2 = jax.random.uniform(k3, (hidden_features, out_features), dtype, -s2, s2)
    b2 = jax.random.uniform(k4, (1, out_features), dtype, -s2, s2)
    return w1, b1, w2, b2


def _reference(x, w1, b1, w2, b2):
    N, H, W, C = x.shape
    h = x.reshape(-1, C) @ w1 + b1
    h = 0.5 * h * (1.0 + jax.lax.erf(h / jnp.sqrt(2.0)))
    return (h @ w2 + b2).reshape(N, H, W, -1)


if __name__ == "__main__":
    key = jax.random.PRNGKey(0)
    k_x, k_p, k_x2 = jax.random.split(key, 3)

    # Case 1: regular shape (M = 128 rows -> auto tile_m=64, grid of 2 parallel steps).
    N, H, W, C = 2, 8, 8, 32
    hidden = 64
    x = jax.random.normal(k_x, (N, H, W, C), dtype=jnp.float32)
    w1, b1, w2, b2 = init_mlp_params(k_p, C, hidden_features=hidden)

    out = jax.block_until_ready(mlp_forward(x, w1, b1, w2, b2))
    ref = _reference(x, w1, b1, w2, b2)
    assert jnp.allclose(out, ref, atol=1e-5, rtol=1e-5), "mismatch vs reference (case 1)"

    # Case 2: ragged row count (M = 70), exercises the masked last block (no jnp.pad path).
    x2 = jax.random.normal(k_x2, (2, 5, 7, C), dtype=jnp.float32)
    out2 = jax.block_until_ready(mlp_forward(x2, w1, b1, w2, b2))
    ref2 = _reference(x2, w1, b1, w2, b2)
    assert jnp.allclose(out2, ref2, atol=1e-5, rtol=1e-5), "mismatch vs reference (case 2)"

    print("KERNEL_OK")
</pallas_src>

<mosaic_0001>
module attributes {stable_mosaic.version = 11 : i64} {
  func.func @_mlp_kernel(%arg0: i32, %arg1: memref<64x32xf32, #tpu.memory_space<vmem>>, %arg2: memref<32x64xf32, #tpu.memory_space<vmem>>, %arg3: memref<1x64xf32, #tpu.memory_space<vmem>>, %arg4: memref<64x32xf32, #tpu.memory_space<vmem>>, %arg5: memref<1x32xf32, #tpu.memory_space<vmem>>, %arg6: memref<64x32xf32, #tpu.memory_space<vmem>>) attributes {dimension_semantics = [#tpu.dimension_semantics<parallel>], iteration_bounds = array<i64: 2>, scalar_prefetch = 0 : i64, scratch_operands = 0 : i64, tpu.core_type = #tpu.core_type<tc>, window_params = [{transform_indices = @transform_0, window_bounds = array<i64: 64, 32>}, {pipeline_mode = #tpu.pipeline_mode<synchronous>, transform_indices = @transform_1, window_bounds = array<i64: 32, 64>}, {pipeline_mode = #tpu.pipeline_mode<synchronous>, transform_indices = @transform_2, window_bounds = array<i64: 1, 64>}, {pipeline_mode = #tpu.pipeline_mode<synchronous>, transform_indices = @transform_3, window_bounds = array<i64: 64, 32>}, {pipeline_mode = #tpu.pipeline_mode<synchronous>, transform_indices = @transform_4, window_bounds = array<i64: 1, 32>}, {transform_indices = @transform_5, window_bounds = array<i64: 64, 32>}]} {
    %c0 = arith.constant 0 : index
    %c0_0 = arith.constant 0 : index
    %0 = vector.load %arg1[%c0, %c0_0] : memref<64x32xf32, #tpu.memory_space<vmem>>, vector<64x32xf32>
    %c0_1 = arith.constant 0 : index
    %c0_2 = arith.constant 0 : index
    %1 = vector.load %arg2[%c0_1, %c0_2] : memref<32x64xf32, #tpu.memory_space<vmem>>, vector<32x64xf32>
    %cst = arith.constant dense<0.000000e+00> : vector<64x64xf32>
    %2 = tpu.matmul %0, %1, %cst {dimension_numbers = #tpu.dot_dimension_numbers<[1], [0], [0], [1], [0, 0, 1, 1], [], []>} : vector<64x32xf32>, vector<32x64xf32>, vector<64x64xf32> -> vector<64x64xf32>
    %c0_3 = arith.constant 0 : index
    %c0_4 = arith.constant 0 : index
    %3 = vector.load %arg3[%c0_3, %c0_4] : memref<1x64xf32, #tpu.memory_space<vmem>>, vector<1x64xf32>
    %4 = vector.broadcast %3 : vector<1x64xf32> to vector<64x64xf32>
    %5 = arith.addf %2, %4 : vector<64x64xf32>
    %cst_5 = arith.constant 5.000000e-01 : f32
    %6 = vector.broadcast %cst_5 : f32 to vector<64x64xf32>
    %7 = arith.mulf %6, %5 : vector<64x64xf32>
    %cst_6 = arith.constant 0.707106769 : f32
    %8 = vector.broadcast %cst_6 : f32 to vector<64x64xf32>
    %9 = arith.mulf %5, %8 : vector<64x64xf32>
    %10 = math.erf %9 : vector<64x64xf32>
    %cst_7 = arith.constant 1.000000e+00 : f32
    %11 = vector.broadcast %cst_7 : f32 to vector<64x64xf32>
    %12 = arith.addf %11, %10 : vector<64x64xf32>
    %13 = arith.mulf %7, %12 : vector<64x64xf32>
    %c0_8 = arith.constant 0 : index
    %c0_9 = arith.constant 0 : index
    %14 = vector.load %arg4[%c0_8, %c0_9] : memref<64x32xf32, #tpu.memory_space<vmem>>, vector<64x32xf32>
    %cst_10 = arith.constant dense<0.000000e+00> : vector<64x32xf32>
    %15 = tpu.matmul %13, %14, %cst_10 {dimension_numbers = #tpu.dot_dimension_numbers<[1], [0], [0], [1], [0, 0, 1, 1], [], []>} : vector<64x64xf32>, vector<64x32xf32>, vector<64x32xf32> -> vector<64x32xf32>
    %c0_11 = arith.constant 0 : index
    %c0_12 = arith.constant 0 : index
    %16 = vector.load %arg5[%c0_11, %c0_12] : memref<1x32xf32, #tpu.memory_space<vmem>>, vector<1x32xf32>
    %17 = vector.broadcast %16 : vector<1x32xf32> to vector<64x32xf32>
    %18 = arith.addf %15, %17 : vector<64x32xf32>
    %c0_13 = arith.constant 0 : index
    %c0_14 = arith.constant 0 : index
    %19 = vector.load %arg6[%c0_13, %c0_14] : memref<64x32xf32, #tpu.memory_space<vmem>>, vector<64x32xf32>
    tpu.vector_store %arg6[%c0_13, %c0_14], %18 {strides = array<i32>} : memref<64x32xf32, #tpu.memory_space<vmem>>, vector<64x32xf32>,
    return
  }
  func.func @transform_0(%arg0: i32) -> (i32, i32) {
    %c0_i32 = arith.constant 0 : i32
    %c0_i32_0 = arith.constant 0 : i32
    return %arg0, %c0_i32 : i32, i32
  }
  func.func @transform_1(%arg0: i32) -> (i32, i32) {
    %c0_i32 = arith.constant 0 : i32
    %c0_i32_0 = arith.constant 0 : i32
    %c0_i32_1 = arith.constant 0 : i32
    return %c0_i32, %c0_i32_0 : i32, i32
  }
  func.func @transform_2(%arg0: i32) -> (i32, i32) {
    %c0_i32 = arith.constant 0 : i32
    %c0_i32_0 = arith.constant 0 : i32
    %c0_i32_1 = arith.constant 0 : i32
    return %c0_i32, %c0_i32_0 : i32, i32
  }
  func.func @transform_3(%arg0: i32) -> (i32, i32) {
    %c0_i32 = arith.constant 0 : i32
    %c0_i32_0 = arith.constant 0 : i32
    %c0_i32_1 = arith.constant 0 : i32
    return %c0_i32, %c0_i32_0 : i32, i32
  }
  func.func @transform_4(%arg0: i32) -> (i32, i32) {
    %c0_i32 = arith.constant 0 : i32
    %c0_i32_0 = arith.constant 0 : i32
    %c0_i32_1 = arith.constant 0 : i32
    return %c0_i32, %c0_i32_0 : i32, i32
  }
  func.func @transform_5(%arg0: i32) -> (i32, i32) {
    %c0_i32 = arith.constant 0 : i32
    %c0_i32_0 = arith.constant 0 : i32
    return %arg0, %c0_i32 : i32, i32
  }
}

</mosaic_0001>

<bundles_post_ra>
// kernel: mlp_forward.1
= control target key start
LH: loop header
LB: loop body
LE: loop exit
PB: predicated region body
PF: predicated region fallthrough
CT: control target
= control target key end

     0   :  { %10 = vsyncpa [#allocation3], 0  ;;  %s1248_s0 = inlined_call_operand.hbm [shape: f32[128,32], index: 0, kind: input, shape index: {}]   ;;  %s1249_s1 = inlined_call_operand.vmem [shape: f32[32,64], index: 1, kind: input, shape index: {}]   ;;  %s1250_s2 = inlined_call_operand.vmem [shape: f32[1,64], index: 2, kind: input, shape index: {}]   ;;  %s1251_s3 = inlined_call_operand.vmem [shape: f32[64,32], index: 3, kind: input, shape index: {}]   ;;  %s1252_s4 = inlined_call_operand.vmem [shape: f32[1,32], index: 4, kind: input, shape index: {}]   ;;  %s1253_s5 = inlined_call_operand.hbm [shape: f32[128,32], index: 5, kind: output, shape index: {}]  }
   0x1   :  { %12 = vsyncpa [#allocation3 + $0x1], 0 }
   0x2   :  { %13 = vsyncpa [#allocation4], 0 }
   0x3   :  { %15 = vsyncpa [#allocation4 + $0x1], 0  ;;  %s1016_s18 = smov 0   ;;  %s1018_s19 = smov 0  }
   0x4   :  { %s1020_s20 = smov 0   ;;  %s1022_s21 = smov 0  }
   0x5 LB: > { %s1037_s22 = sadd.s32 4294967295, %s978_s21   ;;  %s674_s23 = sadd.s32 4294967294, %s978_s21   ;;  %s978_s21 = sphi %s1022_s21, %s1266_s21   ;;  %s974_s20 = sphi %s1020_s20, %s1265_s20   ;;  %s970_s19 = sphi %s1018_s19, %s1264_s19   ;;  %s966_s18 = sphi %s1016_s18, %s1263_s18  }
   0x6   : > { %s1041_s24 = sadd.s32 1, %s978_s21   ;;  %s28_s25 = sadd.s32 1, %s974_s20 }
   0x7   : > { %s25_s26 = ssub.s32 %s978_s21, %s1041_s24  ;;  %p35_p0 = scmp.ne.s32.totalorder %s974_s20, %s970_s19 }
   0x8   : > { %p26_p1 = scmp.eq.s32.totalorder %s25_s26, 0  ;;  %p36_p2 = scmp.eq.s32.totalorder %s978_s21, 0 }
   0x9   : > { %p41_p3 = scmp.ne.s32.totalorder %s970_s19, %s966_s18  ;;  %p42_p4 = scmp.eq.s32.totalorder %s1037_s22, 0 }
   0xa   : > { %s1053_s27 = scalar_select %p26_p1, %s974_s20, %s28_s25  }
   0xb   : > { %p1055_p5 = por %p36_p2, %p35_p0  ;;  %p1059_p6 = por %p42_p4, %p41_p3 }
   0xc   : > { %p149_p7 = scmp.eq.s32.totalorder %s1037_s22, 1  ;;  %p155_p8 = scmp.eq.s32.totalorder %s674_s23, 1 }
   0xd   : > { %p828_p10 = scmp.lt.s32.totalorder %s978_s21, 2  ;;  %s187_s7 = sand.u32 1, %s974_s20  }
   0xe   : > { %p1066_p11 = por %p149_p7, %p35_p0  ;;  %p1070_p12 = por %p155_p8, %p41_p3 }
   0xf   : > { %s706_s8 = sshll.u32 %s978_s21, 10  ;;  %s677_s9 = sshll.u32 %s187_s7, 6 }
  0x10   : > { %s1257_s30 = scalar_select %p1066_p11, 1, 0 }
  0x11   : > { %s1258_s6 = scalar_select %p1070_p12, 1, 0 }
  0x12   : > { %s1079_s12 = scalar_lea.hbm %s1248_s0, %s706_s8  ;;  %s191_s13 = scalar_lea.vmem [#allocation2], %s677_s9 }
  0x13   : > { %s198_s14 = sshll.u32 %s191_s13, 4  ;;  %p1083_p13 = pnand %p828_p10, %p1055_p5  ;;  %s1087_s14 = int_to_ptr.vmem [resolvable:$true] %s198_s14 }
  0x14   : > { %s1089_s16 = scalar_lea.sflag [#allocation3], %s187_s7  ;;  %s882_s17 = scalar_lea.hbm %s1079_s12, 1024 }
  0x15   : > { %p883_p0 = scmp.ne.s32.totalorder %s1079_s12, %s882_s17  ;;  %p884_p1 = pneg %p1083_p13 }
  0x16   : > { %s887_s26 = scalar_lea.hbm %s1248_s0, 2048  ;;  %p888_p4 = scmp.lt.u32.totalorder %s1079_s12, %s1248_s0 }
  0x17   : > { %p885_p2 = pnand %p884_p1, %p883_p0  ;;  %p889_p5 = scmp.lt.u32.totalorder %s887_s26, %s882_s17 }
  0x18   : > { %p891_p8 = scmp.lt.u32.totalorder %s882_s17, %s1079_s12 }
  0x19   : > { %p886_p3 = pneg %p885_p2  ;;  %p890_p7 = por %p889_p5, %p888_p4 }
  0x1b   : > { %p892_p10 = por %p891_p8, %p890_p7 }
  0x1d   : > { %p893_p9 = pnand %p892_p10, %p886_p3 }
  0x1f   : > { %896 = shalt.err (!%p893_p9)
}
  0x20   : > { %s897_s7 = scalar_lea.vmem %s1087_s14, 1024  ;;  %s980_s9 = smov [#allocation2]  }
  0x21   : > { %p898_p0 = scmp.ne.s32.totalorder %s1087_s14, %s897_s7  ;;  %s902_s10 = sshll.u32 %s980_s9, 4  ;;  %s903_s10 = int_to_ptr.vmem [resolvable:$false] %s902_s10 }
  0x22   : > { %s904_s11 = scalar_lea.vmem %s903_s10, 2048  ;;  %p905_p11 = scmp.lt.s32.totalorder %s1087_s14, %s903_s10 }
  0x23   : > { %p900_p2 = pnand %p898_p0, %p884_p1  ;;  %p906_p4 = scmp.lt.s32.totalorder %s904_s11, %s897_s7 }
  0x25   : > { %p901_p12 = pneg %p900_p2  ;;  %p907_p5 = por %p906_p4, %p905_p11 }
  0x27   : > { %p908_p7 = pnand %p907_p5, %p901_p12 }
  0x29   : > { %911 = shalt.err (!%p908_p7)
}
  0x2a   : > { %s981_s13 = smov 128   ;;  %s982_s17 = smov 8  }
  0x2b   : > { %823 = dma.hbm_to_vmem [thread:$0]  (!%p1083_p13), %s1079_s12, 1024, %s1087_s14, %s1089_s16, %s981_s13, %s981_s13, %s982_s17  }
  0x2c   : > { %p680_p9 = scmp.ge.s32.totalorder %s978_s21, 1  ;;  %p206_p1 = scmp.lt.s32.totalorder %s978_s21, 3 }
  0x2e   : > { %p207_p3 = pnand %p680_p9, %p206_p1 }
  0x2f   : > { %s1120_s23 = sand.u32 (!%p207_p3), 1, %s970_s19  }
  0x30   : > { %210 = sbr.rel (%p207_p3) target bundleno = 542 (0x21e), region = 40  ;;  %s681_s25 = sshll.u32 (!%p207_p3), %s1120_s23, 6 }
  0x31   : > { %s213_s26 = scalar_lea.sflag (!%p207_p3), [#allocation3], %s1120_s23  ;;  %s216_s28 = scalar_lea.vmem (!%p207_p3), [#allocation2], %s681_s25 }
  0x37   : > { %957 = dma.done.wait (%p1059_p6), %s213_s26, 1024  }
  0x38   : > { %959 = vsyncadd (%p1059_p6), %s213_s26, 4294966272  ;;  %vm264_vm0 = vcmask 261120   ;;  %v253_v0 = vld [vmem:[%s1249_s1] sm:$0xff]  ;;  %v254_v1 = vld [vmem:[%s1249_s1 + $0x8] sm:$0xff]  ;;  %vm449_vm1 = vcmask 523264   ;;  %s242_s14 = scalar_lea.vmem [#allocation5], %s681_s25 }
  0x39   : > { %v255_v2 = vld [vmem:[%s1249_s1 + $0x10] sm:$0xff]  ;;  %v784_v3 = vpack.c.bf16 %v254_v1, %v253_v0  ;;  %v256_v4 = vld [vmem:[%s1249_s1 + $0x18] sm:$0xff]  ;;  %v245_v5 = vld [vmem:[%s216_s28] sm:$0xff]  ;;  %s601_s25 = sshll.u32 %s242_s14, 4  ;;  %p1260_p11 = scmp.ne.s32.totalorder %s1257_s30, 0  ;;  %s1202_s25 = int_to_ptr.vmem [resolvable:$true] %s601_s25 }
  0x3a   : > { %v788_v6 = vpack.c.bf16 %v256_v4, %v255_v2  ;;  %744 = vmatprep.mubr.msk.f32.mxu0 %vm264_vm0, %v245_v5  ;;  %v246_v7 = vld [vmem:[%s216_s28 + $0x8] sm:$0xff]  ;;  %v247_v8 = vld [vmem:[%s216_s28 + $0x10] sm:$0xff]  ;;  %v248_v9 = vld [vmem:[%s216_s28 + $0x18] sm:$0xff]  ;;  %s912_s7 = scalar_lea.vmem %s1202_s25, 1024  ;;  %s983_s9 = smov [#allocation5]  }
  0x3b   : > { %785 = vmatprep.subr.bf16.mxu0 %v784_v3  ;;  %v249_v10 = vld [vmem:[%s216_s28 + $0x20] sm:$0xff]  ;;  %v250_v11 = vld [vmem:[%s216_s28 + $0x28] sm:$0xff]  ;;  %v251_v12 = vld [vmem:[%s216_s28 + $0x30] sm:$0xff]  ;;  %p913_p6 = scmp.ne.s32.totalorder %s1202_s25, %s912_s7  ;;  %s916_s10 = sshll.u32 %s983_s9, 4  ;;  %s917_s10 = int_to_ptr.vmem [resolvable:$false] %s916_s10 }
  0x3c   : > { %787 = vmatpush3.bf16.msra.mxu0 %v784_v3  ;;  %v252_v13 = vld [vmem:[%s216_s28 + $0x38] sm:$0xff]  ;;  %v434_v14 = vld [vmem:[%s1251_s3] sm:$0xff]  ;;  %v435_v15 = vld [vmem:[%s1251_s3 + $0x8] sm:$0xff]  ;;  %s707_s28 = sshll.u32 %s1037_s22, 10  ;;  %s588_s22 = scalar_lea.sflag [#allocation4], %s1120_s23 }
  0x3d   : > { %789 = vmatprep.subr.bf16.mxu0 %v788_v6  ;;  %v792_v16 = vpack.c.bf16 %v435_v15, %v434_v14  ;;  %v436_v17 = vld [vmem:[%s1251_s3 + $0x10] sm:$0xff]  ;;  %v437_v18 = vld [vmem:[%s1251_s3 + $0x18] sm:$0xff]  ;;  %v438_v20 = vld [vmem:[%s1251_s3 + $0x20] sm:$0xff]  ;;  %s1200_s8 = scalar_lea.hbm %s1253_s5, %s707_s28  ;;  %p914_p12 = pnand %p913_p6, %p1260_p11 }
  0x3e   : > { %v796_v19 = vpack.c.bf16 %v437_v18, %v436_v17  ;;  %v439_v21 = vld [vmem:[%s1251_s3 + $0x28] sm:$0xff]  ;;  %v440_v23 = vld [vmem:[%s1251_s3 + $0x30] sm:$0xff]  ;;  %v441_v24 = vld [vmem:[%s1251_s3 + $0x38] sm:$0xff]  ;;  %s918_s29 = scalar_lea.vmem %s917_s10, 2048  ;;  %p919_p8 = scmp.lt.s32.totalorder %s1202_s25, %s917_s10 }
  0x3f   : > { %808 = vmatprep.subr.bf16.mxu1 %v792_v16  ;;  %v800_v22 = vpack.c.bf16 %v439_v21, %v438_v20  ;;  %v804_v25 = vpack.c.bf16 %v441_v24, %v440_v23  ;;  %v683_v26 = vld [vmem:[%s1250_s2] ss:$0 sm:$0xff]  ;;  %p915_p13 = pneg %p914_p12  ;;  %p920_p10 = scmp.lt.s32.totalorder %s918_s29, %s912_s7 }
  0x40   : > { %791 = vmatpush3.bf16.msra.mxu0 %v788_v6  ;;  %812 = vmatpush3.bf16.msra.mxu1 %v792_v16 }
  0x41   : > { %793 = vmatprep.subr.bf16.mxu0 %v792_v16  ;;  %809 = vmatprep.subr.bf16.mxu1 %v796_v19  ;;  %p921_p0 = por %p920_p10, %p919_p8 }
  0x43   : > { %745 = vmatmul.mubr.msk.f32.vlgmr.msra.gmra.mrb[0].mxu0 %vm264_vm0, %v246_v7  ;;  %p922_p2 = pnand %p921_p0, %p915_p13 }
  0x44   : > { %747 = vmatprep.mubr.msk.f32.mxu0 %vm264_vm0, %v247_v8  ;;  %795 = vmatpush3.bf16.msra.mxu0 %v792_v16 }
  0x45   : > { %797 = vmatprep.subr.bf16.mxu0 %v796_v19  ;;  %813 = vmatpush3.bf16.msra.mxu1 %v796_v19 }
  0x46   : > { %810 = vmatprep.subr.bf16.mxu1 %v800_v22 }
  0x47   : > { %748 = vmatmul.mubr.msk.f32.gmra.mrb[2].mxu0 %vm264_vm0, %v248_v9 }
  0x48   : > { %750 = vmatprep.mubr.msk.f32.mxu0 %vm264_vm0, %v249_v10  ;;  %799 = vmatpush3.bf16.msra.mxu0 %v796_v19  ;;  %v692_v19 = vld [vmem:[%s1252_s4] ss:$0 sm:$0xff] }
  0x49   : > { %801 = vmatprep.subr.bf16.mxu0 %v800_v22  ;;  %814 = vmatpush3.bf16.msra.mxu1 %v800_v22 }
  0x4a   : > { %811 = vmatprep.subr.bf16.mxu1 %v804_v25 }
  0x4b   : > { %751 = vmatmul.mubr.msk.f32.gmra.mrb[4].mxu0 %vm264_vm0, %v250_v11 }
  0x4c   : > { %753 = vmatprep.mubr.msk.f32.mxu0 %vm264_vm0, %v251_v12  ;;  %803 = vmatpush3.bf16.msra.mxu0 %v800_v22 }
  0x4d   : > { %805 = vmatprep.subr.bf16.mxu0 %v804_v25  ;;  %815 = vmatpush3.bf16.msra.mxu1 %v804_v25 }
  0x4f   : > { %754 = vmatmul.mubr.msk.f32.gmra.mrb[6].mxu0 %vm264_vm0, %v252_v13 }
  0x50   : > { %807 = vmatpush3.bf16.msra.mxu0 %v804_v25 }
 0x116   : > { %v746_v27 = vpop.f32.mrb[0].mxu0 }
 0x117   : > { %v361_v28 = vadd.f32 %v746_v27, %v683_v26  ;;  %v355_v29 = vpop.f32.mrb[1].mxu0 }
 0x118   : > { %v356_v30 = vadd.f32 %v683_v26, %v355_v29 }
 0x119   : > { %v403_v31 = vmul.f32 0.70710677, %v361_v28  ;;  %v395_v56 = vmul.f32 0.5, %v361_v28 }
 0x11a   : > { %v402_v32 = vmul.f32 0.70710677, %v356_v30  ;;  %v749_v33 = vpop.f32.mrb[2].mxu0  ;;  %v394_v54 = vmul.f32 0.5, %v356_v30 }
 0x11b   : > { %866 = verf.f32 %v403_v31  ;;  %v371_v34 = vadd.f32 %v749_v33, %v683_v26  ;;  %v365_v35 = vpop.f32.mrb[3].mxu0 }
 0x11c   : > { %868 = verf.f32 %v402_v32  ;;  %v366_v36 = vadd.f32 %v683_v26, %v365_v35 }
 0x11d   : > { %v405_v37 = vmul.f32 0.70710677, %v371_v34  ;;  %v397_v0 = vmul.f32 0.5, %v371_v34 }
 0x11e   : > { %v404_v38 = vmul.f32 0.70710677, %v366_v36  ;;  %v752_v39 = vpop.f32.mrb[4].mxu0  ;;  %v396_v62 = vmul.f32 0.5, %v366_v36 }
 0x11f   : > { %870 = verf.f32 %v405_v37  ;;  %v381_v40 = vadd.f32 %v752_v39, %v683_v26  ;;  %v375_v41 = vpop.f32.mrb[5].mxu0 }
 0x120   : > { %872 = verf.f32 %v404_v38  ;;  %v376_v42 = vadd.f32 %v683_v26, %v375_v41 }
 0x121   : > { %v407_v43 = vmul.f32 0.70710677, %v381_v40  ;;  %v399_v8 = vmul.f32 0.5, %v381_v40 }
 0x122   : > { %v406_v44 = vmul.f32 0.70710677, %v376_v42  ;;  %v755_v45 = vpop.f32.mrb[6].mxu0  ;;  %v398_v6 = vmul.f32 0.5, %v376_v42 }
 0x123   : > { %874 = verf.f32 %v407_v43  ;;  %v391_v46 = vadd.f32 %v755_v45, %v683_v26  ;;  %v385_v47 = vpop.f32.mrb[7].mxu0 }
 0x124   : > { %876 = verf.f32 %v406_v44  ;;  %v386_v48 = vadd.f32 %v683_v26, %v385_v47 }
 0x125   : > { %v867_v49 = vpop.eup %866  ;;  %v409_v50 = vmul.f32 0.70710677, %v391_v46  ;;  %v401_v16 = vmul.f32 0.5, %v391_v46 }
 0x126   : > { %v869_v51 = vpop.eup %868  ;;  %v419_v52 = vadd.f32 1.0, %v867_v49  ;;  %v408_v53 = vmul.f32 0.70710677, %v386_v48  ;;  %v400_v14 = vmul.f32 0.5, %v386_v48 }
 0x127   : > { %v418_v55 = vadd.f32 1.0, %v869_v51  ;;  %878 = verf.f32 %v409_v50 }
 0x128   : > { %880 = verf.f32 %v408_v53  ;;  %v427_v60 = vmul.f32 %v419_v52, %v395_v56 }
 0x129   : > { %v871_v57 = vpop.eup %870  ;;  %v426_v58 = vmul.f32 %v418_v55, %v394_v54 }
 0x12a   : > { %v873_v59 = vpop.eup %872  ;;  %v421_v61 = vadd.f32 1.0, %v871_v57 }
 0x12b   : > { %772 = vmatprep.mubr.msk.f32.mxu0 %vm449_vm1, %v426_v58  ;;  %v420_v63 = vadd.f32 1.0, %v873_v59 }
 0x12c   : > { %773 = vmatmul.mubr.msk.f32.vlgmr.msra.gmra.mrb[8].mxu0 %vm449_vm1, %v427_v60  ;;  %v429_v4 = vmul.f32 %v421_v61, %v397_v0 }
 0x12d   : > { %v875_v1 = vpop.eup %874  ;;  %v428_v2 = vmul.f32 %v420_v63, %v396_v62 }
 0x12e   : > { %v877_v3 = vpop.eup %876  ;;  %v423_v5 = vadd.f32 1.0, %v875_v1 }
 0x12f   : > { %v422_v7 = vadd.f32 1.0, %v877_v3  ;;  %775 = vmatprep.mubr.msk.f32.mxu1 %vm449_vm1, %v428_v2 }
 0x130   : > { %776 = vmatmul.mubr.msk.f32.vlgmr.msra.gmra.mrb[0].mxu1 %vm449_vm1, %v429_v4  ;;  %v431_v12 = vmul.f32 %v423_v5, %v399_v8 }
 0x131   : > { %v879_v9 = vpop.eup %878  ;;  %v430_v10 = vmul.f32 %v422_v7, %v398_v6 }
 0x132   : > { %v881_v11 = vpop.eup %880  ;;  %v425_v13 = vadd.f32 1.0, %v879_v9 }
 0x133   : > { %v424_v15 = vadd.f32 1.0, %v881_v11  ;;  %778 = vmatprep.mubr.msk.f32.mxu1 %vm449_vm1, %v430_v10 }
 0x134   : > { %779 = vmatmul.mubr.msk.f32.gmra.mrb[2].mxu1 %vm449_vm1, %v431_v12  ;;  %v433_v18 = vmul.f32 %v425_v13, %v401_v16 }
 0x135   : > { %v432_v17 = vmul.f32 %v424_v15, %v400_v14 }
 0x137   : > { %781 = vmatprep.mubr.msk.f32.mxu1 %vm449_vm1, %v432_v17 }
 0x138   : > { %782 = vmatmul.mubr.msk.f32.gmra.mrb[4].mxu1 %vm449_vm1, %v433_v18 }
 0x1ff   : > { %v774_v20 = vpop.f32.mrb[8].mxu0 }
 0x200   : > { %v546_v21 = vadd.f32 %v774_v20, %v692_v19  ;;  %v540_v22 = vpop.f32.mrb[9].mxu0 }
 0x201   : > { %v541_v23 = vadd.f32 %v692_v19, %v540_v22 }
 0x202   : > { %580 = vst.msk [vmem:[%s242_s14 + $0x8] sm:$0xff] %vm264_vm0, %v546_v21 }
 0x203   : > { %579 = vst.msk [vmem:[%s242_s14] sm:$0xff] %vm264_vm0, %v541_v23  ;;  %v777_v24 = vpop.f32.mrb[0].mxu1 }
 0x204   : > { %v556_v25 = vadd.f32 %v777_v24, %v692_v19  ;;  %v550_v26 = vpop.f32.mrb[1].mxu1 }
 0x205   : > { %v551_v27 = vadd.f32 %v692_v19, %v550_v26 }
 0x206   : > { %582 = vst.msk [vmem:[%s242_s14 + $0x18] sm:$0xff] %vm264_vm0, %v556_v25 }
 0x207   : > { %581 = vst.msk [vmem:[%s242_s14 + $0x10] sm:$0xff] %vm264_vm0, %v551_v27  ;;  %v780_v28 = vpop.f32.mrb[2].mxu1 }
 0x208   : > { %v566_v29 = vadd.f32 %v780_v28, %v692_v19  ;;  %v560_v30 = vpop.f32.mrb[3].mxu1 }
 0x209   : > { %v561_v31 = vadd.f32 %v692_v19, %v560_v30 }
 0x20a   : > { %584 = vst.msk [vmem:[%s242_s14 + $0x28] sm:$0xff] %vm264_vm0, %v566_v29 }
 0x20b   : > { %583 = vst.msk [vmem:[%s242_s14 + $0x20] sm:$0xff] %vm264_vm0, %v561_v31  ;;  %v783_v32 = vpop.f32.mrb[4].mxu1 }
 0x20c   : > { %v576_v33 = vadd.f32 %v783_v32, %v692_v19  ;;  %v570_v34 = vpop.f32.mrb[5].mxu1 }
 0x20d   : > { %v571_v35 = vadd.f32 %v692_v19, %v570_v34 }
 0x20e   : > { %586 = vst.msk [vmem:[%s242_s14 + $0x38] sm:$0xff] %vm264_vm0, %v576_v33 }
 0x20f   : > { %585 = vst.msk [vmem:[%s242_s14 + $0x30] sm:$0xff] %vm264_vm0, %v571_v35 }
 0x210   : > { %925 = shalt.err (!%p922_p2)
}
 0x211   : > { %s926_s11 = scalar_lea.hbm %s1200_s8, 1024  ;;  %s930_s26 = scalar_lea.hbm %s1253_s5, 2048 }
 0x212   : > { %p927_p4 = scmp.ne.s32.totalorder %s1200_s8, %s926_s11  ;;  %p931_p9 = scmp.lt.u32.totalorder %s1200_s8, %s1253_s5 }
 0x213   : > { %p932_p1 = scmp.lt.u32.totalorder %s930_s26, %s926_s11  ;;  %p934_p6 = scmp.lt.u32.totalorder %s926_s11, %s1200_s8 }
 0x214   : > { %p928_p5 = pnand %p927_p4, %p1260_p11 }
 0x215   : > { %p933_p3 = por %p932_p1, %p931_p9 }
 0x216   : > { %p929_p7 = pneg %p928_p5 }
 0x217   : > { %p935_p12 = por %p934_p6, %p933_p3 }
 0x219   : > { %p936_p13 = pnand %p935_p12, %p929_p7 }
 0x21b   : > { %939 = shalt.err (!%p936_p13)
}
 0x21c   : > { %s984_s28 = smov 128   ;;  %s985_s15 = smov 8  }
 0x21d   : > { %818 = dma.vmem_to_hbm [thread:$0]  (%p1260_p11), %s1202_s25, 1024, %s1200_s8, %s588_s22, %s984_s28, %s984_s28, %s985_s15  }
 0x21e PF: > { %s616_s16 = sand.u32 1, %s966_s18   ;;  %p1261_p8 = scmp.ne.s32.totalorder %s1258_s6, 0 }
 0x21f   : > { %p1262_p10 = scmp.ge.s32.totalorder %s978_s21, 2  ;;  %s617_s7 = scalar_lea.sflag [#allocation4], %s616_s16 }
 0x221   : > { %p825_p0 = pnand %p1262_p10, %p1261_p8 }
 0x223   : > { %961 = dma.done.wait (!%p825_p0), %s617_s7, 1024  }
 0x224   : > { %963 = vsyncadd (!%p825_p0), %s617_s7, 4294966272  ;;  %p18_p2 = scmp.ge.s32.totalorder %s1041_s24, 4   ;;  %s1263_s18 = smov %s970_s19 }
 0x225   : > { %s1264_s19 = smov %s974_s20  ;;  %s1265_s20 = smov %s1053_s27 }
 0x226   : > { %s1266_s21 = smov %s1041_s24  ;;  %20 = sbr.rel (!%p18_p2) target bundleno = 5 (0x5), region = 85 }
 0x22d   :  { %622 = vsyncpa [#allocation3], 1 }
 0x22e   :  { %624 = vsyncpa [#allocation3 + $0x1], 1 }
 0x22f   :  { %625 = vsyncpa [#allocation4], 1 }
 0x230   :  { %627 = vsyncpa [#allocation4 + $0x1], 1 }

</bundles_post_ra>
